<compile_context>
chip_gen: v5e
topology: v5e:2x2
jax: 0.10.0
libtpu: 0.0.40
codegen_flags: <defaults>
</compile_context>

<pallas_src>
import numpy as np
import jax
import jax.numpy as jnp
from jax.experimental import pallas as pl
from jax.experimental.pallas import tpu as pltpu

# ---- problem sizes (small, consistent with an augmented-CNF state vector) ----
B = 8              # batch
D = 16             # total (augmented) state dimension
H = 32             # diffeq hidden width
EFFECTIVE_DIM = 8  # effective_dim passed to AugCNFODEfunc
LANE_OUT = 128     # lane-dense output slab: dy in lanes [0, D), -div in lane D
DA = D + 2         # augmented LHS columns: [y, 1, t]


def _aug_cnf_kernel(ya_ref, w1a_ref, w2p_ref, b2p_ref, c_ref, oneh_ref, out_ref):
    """One grid step = T_blk evaluation points stacked along the row dim.

    ya_ref  : (ROWS, D+2)  rows are [y | 1 | t] per (step, batch) pair
    w1a_ref : (D+2, H)     resident [W1; b1; wt]
    w2p_ref : (H, 128)     resident W2 zero-padded to 128 lanes (lane D is 0)
    b2p_ref : (1, 128)     resident b2 zero-padded (lane D is 0)
    c_ref   : (ROWS, H)    resident hoisted Hutchinson constant (e@W2^T)*(e@W1)
    oneh_ref: (1, 128)     resident one-hot on lane D (where -div lands)
    """
    # ONE MXU push gives z = y@W1 + b1 + t*wt for all rows of the block.
    z = jnp.dot(ya_ref[...], w1a_ref[...], preferred_element_type=jnp.float32)
    h = jnp.tanh(z)                                                     # EUP

    # dy padded to a 128-lane slab -> unmasked lane-dense store.
    dy_pad = jnp.dot(h, w2p_ref[...],
                     preferred_element_type=jnp.float32) + b2p_ref[...]  # (ROWS, 128)

    # Hutchinson estimator with the e-dependent factors hoisted to the wrapper:
    #   div_b = sum_k (e@W2^T)_bk * (e@W1)_bk * (1 - h_bk^2)
    div = jnp.sum(c_ref[...] * (1.0 - h * h), axis=1, keepdims=True)    # (ROWS, 1)

    # lane D of dy_pad is exactly 0 (wrapper zero-pads W2/b2), so adding
    # (-div) * onehot places -div there without an iota/compare/select.
    out_ref[...] = (dy_pad - div * oneh_ref[...]).astype(out_ref.dtype)


def _pick_t_blk(T, max_rows=1024):
    """Largest divisor of T such that T_blk*B <= max_rows (overhead-driven;
    VMEM is a non-issue at this footprint)."""
    best = 1
    for cand in range(1, T + 1):
        if T % cand == 0 and cand * B <= max_rows:
            best = cand
    return best


def aug_cnf_odefunc_eval_steps(ts, ys, params, e):
    """Evaluate the AugCNF ODE function at T (t, y) pairs in ONE pallas_call.

    ts: (T,) time points, ys: (T, B, D) states, e: (B, D) Hutchinson noise
    (fixed for the whole solve, as set by before_odeint / the in-forward
    sampler).  Returns (dy: (T, B, D), -divergence: (T, B, 1)).
    """
    w1, wt, b1, w2, b2 = params
    T = int(ts.shape[0])
    t_blk = _pick_t_blk(T)
    num_blocks = T // t_blk
    rows_blk = t_blk * B

    # Contract of the module's sampler: e is zero outside the effective dims.
    # Keep the mask so the divergence stays restricted to effective_dim even if
    # a caller passes unmasked noise.
    lane_d = jnp.arange(D)[None, :]
    e_m = jnp.where(lane_d < EFFECTIVE_DIM, e.astype(jnp.float32), 0.0)

    # Hoisted Hutchinson constant (e is fixed for the solve):
    #   C[b,k] = (e@W2^T)[b,k] * (e@W1)[b,k]
    c_const = (e_m @ w2.T) * (e_m @ w1)                     # (B, H)
    c_tiled = jnp.tile(c_const, (t_blk, 1))                 # (rows_blk, H), resident

    # Augmented LHS rows [y | 1 | t] and resident augmented W1 = [W1; b1; wt]
    # -> bias and time term come out of the single MXU push, no per-step stream.
    ones_col = jnp.ones((T, B, 1), jnp.float32)
    t_col = jnp.broadcast_to(ts.reshape(T, 1, 1).astype(jnp.float32), (T, B, 1))
    y_aug = jnp.concatenate([ys.astype(jnp.float32), ones_col, t_col],
                            axis=-1).reshape(T * B, DA)     # (T*B, D+2)
    w1_aug = jnp.concatenate([w1, b1, wt], axis=0).astype(jnp.float32)  # (D+2, H)

    # Zero-pad W2/b2 to 128 output lanes: dy lands lane-dense and lane D stays
    # exactly 0 so the kernel can drop -div there (do not change this padding
    # without updating the -div merge).
    w2p = jnp.zeros((H, LANE_OUT), jnp.float32).at[:, :D].set(w2)
    b2p = jnp.zeros((1, LANE_OUT), jnp.float32).at[:, :D].set(b2)
    oneh = jnp.zeros((1, LANE_OUT), jnp.float32).at[:, D].set(1.0)

    # Single-block launches skip the 2-TC split (sub-microsecond shards on v7x
    # would only add cross-core overhead); multi-block launches shard.
    semantics = ("parallel",) if num_blocks > 1 else ("arbitrary",)

    out = pl.pallas_call(
        _aug_cnf_kernel,
        out_shape=jax.ShapeDtypeStruct((T * B, LANE_OUT), jnp.float32),
        grid_spec=pltpu.PrefetchScalarGridSpec(
            num_scalar_prefetch=0,
            grid=(num_blocks,),
            in_specs=[
                pl.BlockSpec((rows_blk, DA), lambda i: (i, 0)),        # [y|1|t] rows
                pl.BlockSpec((DA, H), lambda i: (0, 0)),               # [W1;b1;wt] resident
                pl.BlockSpec((H, LANE_OUT), lambda i: (0, 0)),         # W2 padded resident
                pl.BlockSpec((1, LANE_OUT), lambda i: (0, 0)),         # b2 padded resident
                pl.BlockSpec((rows_blk, H), lambda i: (0, 0)),         # C tiled resident
                pl.BlockSpec((1, LANE_OUT), lambda i: (0, 0)),         # onehot resident
            ],
            out_specs=pl.BlockSpec((rows_blk, LANE_OUT), lambda i: (i, 0)),
        ),
        compiler_params=pltpu.CompilerParams(dimension_semantics=semantics),
    )(y_aug, w1_aug, w2p, b2p, c_tiled, oneh)

    out = out.reshape(T, B, LANE_OUT)
    return out[:, :, :D], out[:, :, D:D + 1]


def aug_cnf_odefunc_forward(t, states, params, e):
    """JAX/Pallas equivalent of AugCNFODEfunc.forward(t, states).

    states: (y, logp, *extras); returns (dy, -divergence, zeros_like(extras)...).
    """
    y = states[0]
    ts = jnp.asarray(t, jnp.float32).reshape((1,))
    dys, negdivs = aug_cnf_odefunc_eval_steps(ts, y[None], params, e)
    extras = [jnp.zeros_like(s_) for s_ in states[2:]]
    return tuple([dys[0], negdivs[0]] + extras)


def _init_params(key):
    """Deterministic synthetic diffeq parameters (no checkpoint load)."""
    k1, k2, k3 = jax.random.split(key, 3)
    w1 = jax.random.normal(k1, (D, H), jnp.float32) * (1.0 / np.sqrt(D))
    wt = jax.random.normal(k2, (1, H), jnp.float32) * 0.1
    b1 = jnp.zeros((1, H), jnp.float32)
    w2 = jax.random.normal(k3, (H, D), jnp.float32) * (1.0 / np.sqrt(H))
    b2 = jnp.zeros((1, D), jnp.float32)
    return (w1, wt, b1, w2, b2)


def _reference(t, y, e, params):
    """Pure-JAX reference (autodiff VJP), mirrors divergence_approx_aug."""
    w1, wt, b1, w2, b2 = params

    def diffeq(yy):
        h = jnp.tanh(yy @ w1 + t * wt + b1)
        return h @ w2 + b2

    dy, vjp_fn = jax.vjp(diffeq, y)
    (eJ,) = vjp_fn(e)
    div = jnp.sum((eJ * e)[:, :EFFECTIVE_DIM], axis=1, keepdims=True)
    return dy, -div


if __name__ == "__main__":
    key = jax.random.PRNGKey(0)
    kp, ky, ke, ks = jax.random.split(key, 4)

    params = _init_params(kp)

    # T evaluation points of one solve (e.g. 4 RK stages), fused in ONE launch
    # and ONE grid step (all rows batched into the MXU row dimension).
    T = 4
    ts = jnp.linspace(0.0, 1.0, T).astype(jnp.float32)
    ys = jax.random.normal(ky, (T, B, D), jnp.float32)

    # Hutchinson noise: gaussian on the first EFFECTIVE_DIM dims, zero elsewhere
    # (rademacher=False path), fixed for the whole solve.
    e_eff = jax.random.normal(ke, (B, EFFECTIVE_DIM), jnp.float32)
    e = jnp.zeros((B, D), jnp.float32).at[:, :EFFECTIVE_DIM].set(e_eff)

    dys, negdivs = jax.block_until_ready(
        aug_cnf_odefunc_eval_steps(ts, ys, params, e))

    for i in range(T):
        dy_ref, nd_ref = _reference(ts[i], ys[i], e, params)
        np.testing.assert_allclose(np.asarray(dys[i]), np.asarray(dy_ref),
                                   rtol=1e-5, atol=1e-5)
        np.testing.assert_allclose(np.asarray(negdivs[i]), np.asarray(nd_ref),
                                   rtol=1e-4, atol=1e-4)

    # Module-semantics single-call path: forward(t, states) -> (dy, -div, zeros...)
    logp = jnp.zeros((B, 1), jnp.float32)
    extra = jax.random.normal(ks, (B, 4), jnp.float32)   # an extra state s_
    out = jax.block_until_ready(
        aug_cnf_odefunc_forward(0.5, (ys[0], logp, extra), params, e))
    dy1, nd1, zeros_extra = out

    dy_ref, nd_ref = _reference(jnp.float32(0.5), ys[0], e, params)
    np.testing.assert_allclose(np.asarray(dy1), np.asarray(dy_ref),
                               rtol=1e-5, atol=1e-5)
    np.testing.assert_allclose(np.asarray(nd1), np.asarray(nd_ref),
                               rtol=1e-4, atol=1e-4)
    assert zeros_extra.shape == extra.shape and not np.any(np.asarray(zeros_extra))

    print("KERNEL_OK")
</pallas_src>

<mosaic_0001>
module attributes {stable_mosaic.version = 11 : i64} {
  func.func @_aug_cnf_kernel(%arg0: i32, %arg1: memref<32x18xf32, #tpu.memory_space<vmem>>, %arg2: memref<18x32xf32, #tpu.memory_space<vmem>>, %arg3: memref<32x128xf32, #tpu.memory_space<vmem>>, %arg4: memref<1x128xf32, #tpu.memory_space<vmem>>, %arg5: memref<32x32xf32, #tpu.memory_space<vmem>>, %arg6: memref<1x128xf32, #tpu.memory_space<vmem>>, %arg7: memref<32x128xf32, #tpu.memory_space<vmem>>) attributes {dimension_semantics = [#tpu.dimension_semantics<arbitrary>], iteration_bounds = array<i64: 1>, scalar_prefetch = 0 : i64, scratch_operands = 0 : i64, tpu.core_type = #tpu.core_type<tc>, window_params = [{transform_indices = @transform_0, window_bounds = array<i64: 32, 18>}, {pipeline_mode = #tpu.pipeline_mode<synchronous>, transform_indices = @transform_1, window_bounds = array<i64: 18, 32>}, {pipeline_mode = #tpu.pipeline_mode<synchronous>, transform_indices = @transform_2, window_bounds = array<i64: 32, 128>}, {pipeline_mode = #tpu.pipeline_mode<synchronous>, transform_indices = @transform_3, window_bounds = array<i64: 1, 128>}, {pipeline_mode = #tpu.pipeline_mode<synchronous>, transform_indices = @transform_4, window_bounds = array<i64: 32, 32>}, {pipeline_mode = #tpu.pipeline_mode<synchronous>, transform_indices = @transform_5, window_bounds = array<i64: 1, 128>}, {transform_indices = @transform_6, window_bounds = array<i64: 32, 128>}]} {
    %c0 = arith.constant 0 : index
    %c0_0 = arith.constant 0 : index
    %0 = vector.load %arg1[%c0, %c0_0] : memref<32x18xf32, #tpu.memory_space<vmem>>, vector<32x18xf32>
    %c0_1 = arith.constant 0 : index
    %c0_2 = arith.constant 0 : index
    %1 = vector.load %arg2[%c0_1, %c0_2] : memref<18x32xf32, #tpu.memory_space<vmem>>, vector<18x32xf32>
    %cst = arith.constant dense<0.000000e+00> : vector<32x32xf32>
    %2 = tpu.matmul %0, %1, %cst {dimension_numbers = #tpu.dot_dimension_numbers<[1], [0], [0], [1], [0, 0, 1, 1], [], []>} : vector<32x18xf32>, vector<18x32xf32>, vector<32x32xf32> -> vector<32x32xf32>
    %3 = math.tanh %2 : vector<32x32xf32>
    %c0_3 = arith.constant 0 : index
    %c0_4 = arith.constant 0 : index
    %4 = vector.load %arg3[%c0_3, %c0_4] : memref<32x128xf32, #tpu.memory_space<vmem>>, vector<32x128xf32>
    %cst_5 = arith.constant dense<0.000000e+00> : vector<32x128xf32>
    %5 = tpu.matmul %3, %4, %cst_5 {dimension_numbers = #tpu.dot_dimension_numbers<[1], [0], [0], [1], [0, 0, 1, 1], [], []>} : vector<32x32xf32>, vector<32x128xf32>, vector<32x128xf32> -> vector<32x128xf32>
    %c0_6 = arith.constant 0 : index
    %c0_7 = arith.constant 0 : index
    %6 = vector.load %arg4[%c0_6, %c0_7] : memref<1x128xf32, #tpu.memory_space<vmem>>, vector<1x128xf32>
    %7 = vector.broadcast %6 : vector<1x128xf32> to vector<32x128xf32>
    %8 = arith.addf %5, %7 : vector<32x128xf32>
    %c0_8 = arith.constant 0 : index
    %c0_9 = arith.constant 0 : index
    %9 = vector.load %arg5[%c0_8, %c0_9] : memref<32x32xf32, #tpu.memory_space<vmem>>, vector<32x32xf32>
    %10 = arith.mulf %3, %3 : vector<32x32xf32>
    %cst_10 = arith.constant 1.000000e+00 : f32
    %11 = vector.broadcast %cst_10 : f32 to vector<32x32xf32>
    %12 = arith.subf %11, %10 : vector<32x32xf32>
    %13 = arith.mulf %9, %12 : vector<32x32xf32>
    %cst_11 = arith.constant dense<0.000000e+00> : vector<32xf32>
    %14 = vector.multi_reduction <add>, %13, %cst_11 [1] : vector<32x32xf32> to vector<32xf32>
    %15 = vector.shape_cast %14 : vector<32xf32> to vector<32x1xf32>
    %c0_12 = arith.constant 0 : index
    %c0_13 = arith.constant 0 : index
    %16 = vector.load %arg6[%c0_12, %c0_13] : memref<1x128xf32, #tpu.memory_space<vmem>>, vector<1x128xf32>
    %17 = vector.broadcast %15 : vector<32x1xf32> to vector<32x128xf32>
    %18 = vector.broadcast %16 : vector<1x128xf32> to vector<32x128xf32>
    %19 = arith.mulf %17, %18 : vector<32x128xf32>
    %20 = arith.subf %8, %19 : vector<32x128xf32>
    %c0_14 = arith.constant 0 : index
    %c0_15 = arith.constant 0 : index
    %21 = vector.load %arg7[%c0_14, %c0_15] : memref<32x128xf32, #tpu.memory_space<vmem>>, vector<32x128xf32>
    tpu.vector_store %arg7[%c0_14, %c0_15], %20 {strides = array<i32>} : memref<32x128xf32, #tpu.memory_space<vmem>>, vector<32x128xf32>,
    return
  }
  func.func @transform_0(%arg0: i32) -> (i32, i32) {
    %c0_i32 = arith.constant 0 : i32
    %c0_i32_0 = arith.constant 0 : i32
    return %arg0, %c0_i32 : i32, i32
  }
  func.func @transform_1(%arg0: i32) -> (i32, i32) {
    %c0_i32 = arith.constant 0 : i32
    %c0_i32_0 = arith.constant 0 : i32
    %c0_i32_1 = arith.constant 0 : i32
    return %c0_i32, %c0_i32_0 : i32, i32
  }
  func.func @transform_2(%arg0: i32) -> (i32, i32) {
    %c0_i32 = arith.constant 0 : i32
    %c0_i32_0 = arith.constant 0 : i32
    %c0_i32_1 = arith.constant 0 : i32
    return %c0_i32, %c0_i32_0 : i32, i32
  }
  func.func @transform_3(%arg0: i32) -> (i32, i32) {
    %c0_i32 = arith.constant 0 : i32
    %c0_i32_0 = arith.constant 0 : i32
    %c0_i32_1 = arith.constant 0 : i32
    return %c0_i32, %c0_i32_0 : i32, i32
  }
  func.func @transform_4(%arg0: i32) -> (i32, i32) {
    %c0_i32 = arith.constant 0 : i32
    %c0_i32_0 = arith.constant 0 : i32
    %c0_i32_1 = arith.constant 0 : i32
    return %c0_i32, %c0_i32_0 : i32, i32
  }
  func.func @transform_5(%arg0: i32) -> (i32, i32) {
    %c0_i32 = arith.constant 0 : i32
    %c0_i32_0 = arith.constant 0 : i32
    %c0_i32_1 = arith.constant 0 : i32
    return %c0_i32, %c0_i32_0 : i32, i32
  }
  func.func @transform_6(%arg0: i32) -> (i32, i32) {
    %c0_i32 = arith.constant 0 : i32
    %c0_i32_0 = arith.constant 0 : i32
    return %arg0, %c0_i32 : i32, i32
  }
}

</mosaic_0001>

<bundles_post_ra>
// kernel: tpu_custom_call.1
= control target key start
LH: loop header
LB: loop body
LE: loop exit
PB: predicated region body
PF: predicated region fallthrough
CT: control target
= control target key end

     0   :  { %11 = vsyncpa [#allocation3], 0  ;;  %s390_s0 = inlined_call_operand.vmem [shape: f32[32,18], index: 0, kind: input, shape index: {}]   ;;  %s391_s1 = inlined_call_operand.vmem [shape: f32[18,32], index: 1, kind: input, shape index: {}]   ;;  %s392_s2 = inlined_call_operand.vmem [shape: f32[32,128], index: 2, kind: input, shape index: {}]   ;;  %s393_s3 = inlined_call_operand.vmem [shape: f32[1,128], index: 3, kind: input, shape index: {}]   ;;  %s394_s4 = inlined_call_operand.hbm [shape: f32[32,32], index: 4, kind: input, shape index: {}]   ;;  %s395_s5 = inlined_call_operand.vmem [shape: f32[1,128], index: 5, kind: input, shape index: {}]   ;;  %s396_s6 = inlined_call_operand.hbm [shape: f32[32,128], index: 6, kind: output, shape index: {}]  }
   0x1   :  { %12 = vsyncpa [#allocation4], 0  ;;  %s25_s23 = sshll.u32 %s394_s4, 4  ;;  %s292_s24 = smov [#allocation2]   ;;  %s26_s23 = int_to_ptr.hbm [resolvable:$true] %s25_s23 }
   0x2   :  { %s27_s25 = sshll.u32 %s292_s24, 4  ;;  %s293_s26 = smov 128   ;;  %s28_s25 = int_to_ptr.vmem [resolvable:$true] %s27_s25 }
   0x3   :  { %s294_s27 = smov 8  }
   0x4   :  { %33 = dma.hbm_to_vmem [thread:$0]  %s26_s23, 512, %s28_s25, [#allocation3], %s293_s26, %s293_s26, %s294_s27  }
   0x5   :  { %288 = dma.done.wait [#allocation3], 512  }
   0x6   :  { %289 = vsyncadd [#allocation3], 4294966784  ;;  %vm60_vm0 = vcmask 1041408   ;;  %v46_v0 = vld [vmem:[%s391_s1 + $0x10] sm:$0x3]  ;;  %v45_v1 = vld [vmem:[%s391_s1 + $0x8] sm:$0xff] }
   0x7   :  { %210 = vmatpush.msk.msra.mxu0 %vm60_vm0, %v46_v0  ;;  %219 = vmatpush.msk.msra.mxu3 %vm60_vm0, %v46_v0  ;;  %v44_v2 = vld [vmem:[%s391_s1] sm:$0xff]  ;;  %vm47_vm1 = vcmask 146432   ;;  %v41_v4 = vld [vmem:[%s390_s0 + $0x8] sm:$0xff]  ;;  %v42_v5 = vld [vmem:[%s390_s0 + $0x10] sm:$0xff]  ;;  %vm105_vm2 = vcmask 261120   ;;  %s197_s30 = sshll.u32 %s396_s6, 4  ;;  %s198_s30 = int_to_ptr.hbm [resolvable:$true] %s197_s30 }
   0x8   :  { %v40_v3 = vld [vmem:[%s390_s0] sm:$0xff]  ;;  %v43_v6 = vld [vmem:[%s390_s0 + $0x18] sm:$0xff]  ;;  %v99_v8 = vld [vmem:[%s392_s2 + $0x10] sm:$0xff] }
   0x9   :  { %78 = vmatpush.msra.mxu0 %v45_v1  ;;  %220 = vmatpush.msra.mxu3 %v45_v1  ;;  %v100_v7 = vld [vmem:[%s392_s2 + $0x18] sm:$0xff]  ;;  %v98_v9 = vld [vmem:[%s392_s2 + $0x8] sm:$0xff]  ;;  %v97_v10 = vld [vmem:[%s392_s2] sm:$0xff] }
   0xa   :  { %130 = vmatpush.msra.mxu1 %v100_v7  ;;  %222 = vmatpush.msra.mxu2 %v100_v7  ;;  %v147_v15 = vld [vmem:[#allocation2] sm:$0xff]  ;;  %v148_v22 = vld [vmem:[#allocation2 + $0x8] sm:$0xff]  ;;  %v149_v29 = vld [vmem:[#allocation2 + $0x10] sm:$0xff] }
   0xb   :  { %79 = vmatpush.msra.mxu0 %v44_v2  ;;  %221 = vmatpush.msra.mxu3 %v44_v2  ;;  %v150_v35 = vld [vmem:[#allocation2 + $0x18] sm:$0xff]  ;;  %v230_v39 = vld [vmem:[%s395_s5] ss:$0 sm:$0xff]  ;;  %s295_s5 = smov [#allocation5]  }
   0xc   :  { %211 = vmatmul.msk.f32.vlgmr.msra.gmra.mxu0 %vm47_vm1, %v40_v3  ;;  %212 = vmatmul.msk.f32.vlgmr.msra.gmra.mxu3 %vm47_vm1, %v41_v4  ;;  %v231_v42 = vld [vmem:[%s393_s3] ss:$0 sm:$0xff]  ;;  %s195_s3 = sshll.u32 %s295_s5, 4  ;;  %s196_s3 = int_to_ptr.vmem [resolvable:$true] %s195_s3 }
   0xd   :  { %131 = vmatpush.msra.mxu1 %v99_v8  ;;  %223 = vmatpush.msra.mxu2 %v99_v8 }
   0xf   :  { %132 = vmatpush.msra.mxu1 %v98_v9  ;;  %224 = vmatpush.msra.mxu2 %v98_v9 }
  0x11   :  { %133 = vmatpush.msra.mxu1 %v97_v10  ;;  %225 = vmatpush.msra.mxu2 %v97_v10 }
  0x14   :  { %213 = vmatmul.msk.f32.gmra.mxu3 %vm47_vm1, %v42_v5 }
  0x1c   :  { %214 = vmatmul.msk.f32.gmra.mxu3 %vm47_vm1, %v43_v6 }
  0x89   :  { %v81_v11 = vpop.f32.mrf.mxu0 }
  0x8a   :  { %232 = vtanh.f32 %v81_v11 }
  0x8f   :  { %v84_v12 = vpop.f32.mrf.mxu3 }
  0x90   :  { %v233_v13 = vpop.eup %232  ;;  %234 = vtanh.f32 %v84_v12 }
  0x91   :  { %215 = vmatmul.msk.f32.vlgmr.msra.gmra.mxu1 %vm105_vm2, %v233_v13  ;;  %v151_v14 = vmul.f32 %v233_v13, %v233_v13 }
  0x93   :  { %v155_v16 = vsub.f32 1.0, %v151_v14 }
  0x95   :  { %v159_v17 = vmul.f32 %v155_v16, %v147_v15 }
  0x96   :  { %v235_v18 = vpop.eup %234 }
  0x97   :  { %v87_v19 = vpop.f32.mrf.mxu3  ;;  %v163_v20 = vsel %vm105_vm2, %v159_v17, 0.0  ;;  %v152_v21 = vmul.f32 %v235_v18, %v235_v18 }
  0x98   :  { %236 = vtanh.f32 %v87_v19  ;;  %164 = vadd.xlane.f32.xlu0 %v163_v20 }
  0x99   :  { %216 = vmatmul.msk.f32.gmra.mxu1 %vm105_vm2, %v235_v18  ;;  %v156_v23 = vsub.f32 1.0, %v152_v21 }
  0x9b   :  { %v160_v24 = vmul.f32 %v156_v23, %v148_v22 }
  0x9d   :  { %v166_v27 = vsel %vm105_vm2, %v160_v24, 0.0 }
  0x9e   :  { %v237_v25 = vpop.eup %236 }
  0x9f   :  { %v90_v26 = vpop.f32.mrf.mxu3  ;;  %217 = vmatmul.msk.f32.vlgmr.msra.gmra.mxu2 %vm105_vm2, %v237_v25  ;;  %v153_v28 = vmul.f32 %v237_v25, %v237_v25 }
  0xa0   :  { %238 = vtanh.f32 %v90_v26  ;;  %167 = vadd.xlane.f32.xlu0 %v166_v27 }
  0xa1   :  { %v157_v30 = vsub.f32 1.0, %v153_v28 }
  0xa3   :  { %v161_v31 = vmul.f32 %v157_v30, %v149_v29 }
  0xa5   :  { %v169_v32 = vsel %vm105_vm2, %v161_v31, 0.0 }
  0xa6   :  { %v239_v33 = vpop.eup %238  ;;  %170 = vadd.xlane.f32.xlu1 %v169_v32 }
  0xa7   :  { %218 = vmatmul.msk.f32.gmra.mxu2 %vm105_vm2, %v239_v33  ;;  %v154_v34 = vmul.f32 %v239_v33, %v239_v33 }
  0xa9   :  { %v158_v36 = vsub.f32 1.0, %v154_v34 }
  0xab   :  { %v162_v37 = vmul.f32 %v158_v36, %v150_v35 }
  0xad   :  { %v172_v38 = vsel %vm105_vm2, %v162_v37, 0.0 }
  0xae   :  { %173 = vadd.xlane.f32.xlu1 %v172_v38 }
 0x10b   :  { %v165_v40 = vpop.xlane.xlu0 %164 }
 0x10c   :  { %v179_v41 = vmul.f32 %v230_v39, %v165_v40 }
 0x10e   :  { %v135_v43 = vpop.f32.mrf.mxu1 }
 0x10f   :  { %v136_v44 = vadd.f32 %v231_v42, %v135_v43 }
 0x111   :  { %v183_v45 = vsub.f32 %v136_v44, %v179_v41 }
 0x113   :  { %187 = vst [vmem:[#allocation5] sm:$0xff] %v183_v45  ;;  %v168_v46 = vpop.xlane.xlu0 %167 }
 0x114   :  { %v180_v48 = vmul.f32 %v230_v39, %v168_v46 }
 0x116   :  { %v138_v47 = vpop.f32.mrf.mxu1 }
 0x117   :  { %v139_v49 = vadd.f32 %v231_v42, %v138_v47 }
 0x119   :  { %v184_v50 = vsub.f32 %v139_v49, %v180_v48  ;;  %v171_v51 = vpop.xlane.xlu1 %170 }
 0x11a   :  { %v181_v53 = vmul.f32 %v230_v39, %v171_v51 }
 0x11b   :  { %188 = vst [vmem:[#allocation5 + $0x8] sm:$0xff] %v184_v50 }
 0x121   :  { %v174_v56 = vpop.xlane.xlu1 %173 }
 0x122   :  { %v141_v52 = vpop.f32.mrf.mxu2  ;;  %v182_v58 = vmul.f32 %v230_v39, %v174_v56 }
 0x123   :  { %v142_v54 = vadd.f32 %v231_v42, %v141_v52 }
 0x125   :  { %v185_v55 = vsub.f32 %v142_v54, %v181_v53 }
 0x127   :  { %189 = vst [vmem:[#allocation5 + $0x10] sm:$0xff] %v185_v55 }
 0x12a   :  { %v144_v57 = vpop.f32.mrf.mxu2 }
 0x12b   :  { %v145_v59 = vadd.f32 %v231_v42, %v144_v57 }
 0x12d   :  { %v186_v60 = vsub.f32 %v145_v59, %v182_v58 }
 0x12f   :  { %190 = vst [vmem:[#allocation5 + $0x18] sm:$0xff] %v186_v60 }
 0x130   :  { %203 = dma.vmem_to_hbm [thread:$0]  %s196_s3, 512, %s198_s30, [#allocation4], %s293_s26, %s293_s26, %s294_s27  }
 0x131   :  { %290 = dma.done.wait [#allocation4], 512  }
 0x132   :  { %291 = vsyncadd [#allocation4], 4294966784 }
 0x133   :  { %208 = vsyncpa [#allocation3], 1 }
 0x134   :  { %209 = vsyncpa [#allocation4], 1 }

</bundles_post_ra>
